<compile_context>
chip_gen: v7x
topology: tpu7x:2x2x1
jax: 0.10.0
libtpu: 0.0.40
codegen_flags: <defaults>
</compile_context>

<pallas_src>
import math
from functools import partial

import jax
import jax.numpy as jnp
from jax import lax
from jax.experimental import pallas as pl
from jax.experimental.pallas import tpu as pltpu


def _round_up(x, m):
    return ((x + m - 1) // m) * m


def _down_kernel(x_ref, w1_ref, s1_ref, t1_ref, w2_ref, s2_ref, t2_ref, o_ref,
                 *, lh):
    # x_ref : (rows, Cin_p)   bf16  -- already max-pooled, channels-last,
    #                                  rows = bt * lh (whole batch items only)
    # wN_ref: (3, C, Cout_p)  bf16  -- conv taps (l-1, l, l+1) on the leading axis
    # sN/tN : (1, Cout_p)     f32   -- folded conv-bias + BatchNorm scale / shift
    # o_ref : (rows, Cout_p)  bf16
    rows = o_ref.shape[0]

    # Conv zero-padding == batch-item boundaries: a shifted row is invalid when it
    # crosses a multiple of lh.  A handful of VPU ops, no DMA, computed once and
    # reused by both convs.
    pos = lax.broadcasted_iota(jnp.int32, (rows, 1), 0) % lh
    has_left = pos != 0
    has_right = pos != (lh - 1)

    def conv_bn_relu(act, w_ref, s_ref, t_ref):
        # act: (rows, C) bf16.  Row shifts on the (otherwise idle) XLU; the rotate
        # itself runs on an f32 copy, the masked taps feed the MXU in bf16.
        act32 = act.astype(jnp.float32)
        left = jnp.where(has_left, pltpu.roll(act32, shift=1, axis=0),
                         0.0).astype(jnp.bfloat16)                   # x[l-1]
        right = jnp.where(has_right, pltpu.roll(act32, shift=rows - 1, axis=0),
                          0.0).astype(jnp.bfloat16)                  # x[l+1]
        # Three accumulating dots: same MXU flops as one K=3C matmul, but no
        # materialized im2col buffer.  f32 accumulation on the MXU.
        acc = jnp.dot(act, w_ref[1], preferred_element_type=jnp.float32)
        acc = acc + jnp.dot(left, w_ref[0], preferred_element_type=jnp.float32)
        acc = acc + jnp.dot(right, w_ref[2], preferred_element_type=jnp.float32)
        acc = acc * s_ref[...] + t_ref[...]          # folded conv-bias + BatchNorm
        return jnp.maximum(acc, 0.0).astype(jnp.bfloat16)            # ReLU -> bf16

    h = conv_bn_relu(x_ref[...], w1_ref, s1_ref, t1_ref)
    y = conv_bn_relu(h, w2_ref, s2_ref, t2_ref)
    o_ref[...] = y.astype(o_ref.dtype)


def down_pallas(x_ncl, params, *, eps=1e-5):
    """x_ncl: (B, in_ch, L) float32 (PyTorch NCL). Returns (B, out_ch, L//2) bf16."""
    (w1, b1, g1, be1, m1, v1, w2, b2, g2, be2, m2, v2) = params
    B, Cin, L = x_ncl.shape
    Cout = w1.shape[0]
    Lh = L // 2                               # MaxPool1d(2) floors odd lengths
    assert Lh >= 1, "input length must be >= 2"
    L2 = 2 * Lh

    cin_p = _round_up(max(Cin, 1), 128)       # lane-dense channels
    cout_p = _round_up(max(Cout, 1), 128)
    # NOTE: for very small channel counts most lanes are zero padding; a
    # length-on-lanes layout would fix that but is a larger redesign.

    # ---- bt = batch items per grid step ---------------------------------------
    # Candidates must satisfy sublane alignment ((bt*Lh) % 8 == 0) AND a VMEM
    # budget that counts double-buffered in/out blocks, weights, and the f32
    # in-kernel temporaries -- chosen simultaneously so neither constraint undoes
    # the other.
    bt_align = 8 // math.gcd(Lh, 8)

    def step_vmem_bytes(bt):
        rows = bt * Lh
        io = 2 * rows * cin_p * 2 + 2 * rows * cout_p * 2     # double-buffered bf16
        wts = (3 * cin_p + 3 * cout_p) * cout_p * 2 + 4 * cout_p * 4
        temps = rows * (16 * cin_p + 24 * cout_p)             # f32 rolls / acc / h
        return io + wts + temps

    vmem_budget = 24 << 20                    # headroom vs. the 48 MiB scoped limit
    rows_target = 1024 if max(cin_p, cout_p) <= 128 else 256
    bt_hi = _round_up(max(B, 1), bt_align)
    bt = bt_align
    for cand in range(bt_align, bt_hi + 1, bt_align):
        if step_vmem_bytes(cand) > vmem_budget:
            break
        bt = cand
        if cand * Lh >= rows_target:
            break
    # v7x megacore: keep the parallel grid at >= 2 steps when the batch allows it.
    if B > 1:
        bt_mc = _round_up(-(-B // 2), bt_align)
        if bt_mc < B:
            bt = min(bt, bt_mc)
    bp = _round_up(B, bt)
    rows_per_step = bt * Lh
    grid_steps = bp // bt

    # ------------- glue: layout + parameter folding (bf16, no hot compute) -----
    # Cast to bf16 FIRST so the transpose/pad glue moves half the bytes, and fold
    # the MaxPool1d(2) into the same reshuffle (reduce-max over the pair axis) so
    # the kernel reads rows*Cin_p instead of 2*rows*Cin_p.
    # (bf16-rounding before the max == max before rounding: rounding is monotone.)
    x = x_ncl[:, :, :L2].astype(jnp.bfloat16)                        # (B, Cin, L2)
    x = jnp.max(x.reshape(B, Cin, Lh, 2), axis=-1)                   # MaxPool1d(2)
    x = jnp.transpose(x, (0, 2, 1))                                  # (B, Lh, Cin)
    x = jnp.pad(x, ((0, bp - B), (0, 0), (0, cin_p - Cin)))          # (bp, Lh, Cp)
    x2d = x.reshape(bp * Lh, cin_p)

    def pack_w(w, cin_pad):                   # (Cout, Cin, 3) -> (3, Cin_p, Cout_p)
        k = jnp.transpose(w, (2, 1, 0)).astype(jnp.float32)          # (3, Cin, Cout)
        k = jnp.pad(k, ((0, 0), (0, cin_pad - k.shape[1]), (0, cout_p - Cout)))
        return k.astype(jnp.bfloat16)

    w1p = pack_w(w1, cin_p)
    w2p = pack_w(w2, cout_p)

    def fold_bn(b, g, be, m, v):              # conv-bias + BN -> scale/shift
        s = (g / jnp.sqrt(v + eps)).astype(jnp.float32)
        t = ((b - m) * s + be).astype(jnp.float32)
        s = jnp.pad(s, (0, cout_p - Cout)).reshape(1, cout_p)        # padded ch -> 0
        t = jnp.pad(t, (0, cout_p - Cout)).reshape(1, cout_p)
        return s, t

    s1, t1 = fold_bn(b1, g1, be1, m1, v1)
    s2, t2 = fold_bn(b2, g2, be2, m2, v2)

    flops = 2 * bp * Lh * 3 * (cin_p + cout_p) * cout_p
    bytes_accessed = (x2d.size * 2 + bp * Lh * cout_p * 2
                      + w1p.size * 2 + w2p.size * 2 + 4 * cout_p * 4)

    out2d = pl.pallas_call(
        partial(_down_kernel, lh=Lh),
        out_shape=jax.ShapeDtypeStruct((bp * Lh, cout_p), jnp.bfloat16),
        grid_spec=pltpu.PrefetchScalarGridSpec(
            num_scalar_prefetch=0,
            grid=(grid_steps,),
            in_specs=[
                pl.BlockSpec((rows_per_step, cin_p), lambda i: (i, 0)),
                pl.BlockSpec((3, cin_p, cout_p), lambda i: (0, 0, 0)),
                pl.BlockSpec((1, cout_p), lambda i: (0, 0)),
                pl.BlockSpec((1, cout_p), lambda i: (0, 0)),
                pl.BlockSpec((3, cout_p, cout_p), lambda i: (0, 0, 0)),
                pl.BlockSpec((1, cout_p), lambda i: (0, 0)),
                pl.BlockSpec((1, cout_p), lambda i: (0, 0)),
            ],
            out_specs=pl.BlockSpec((rows_per_step, cout_p), lambda i: (i, 0)),
        ),
        compiler_params=pltpu.CompilerParams(
            dimension_semantics=("parallel",),
            vmem_limit_bytes=48 * 1024 * 1024),
        cost_estimate=pl.CostEstimate(flops=flops, transcendentals=0,
                                      bytes_accessed=bytes_accessed),
    )(x2d, w1p, s1, t1, w2p, s2, t2)

    out = out2d.reshape(bp, Lh, cout_p)[:B, :, :Cout]
    return jnp.transpose(out, (0, 2, 1))      # (B, Cout, Lh), bf16


# ---------------- pure-JAX reference (correctness check only) -----------------
def _ref_down(x_ncl, params, eps=1e-5):
    (w1, b1, g1, be1, m1, v1, w2, b2, g2, be2, m2, v2) = params
    B, C, L = x_ncl.shape
    Lh = L // 2
    x = jnp.max(x_ncl[:, :, :2 * Lh].reshape(B, C, Lh, 2), axis=-1)   # MaxPool1d(2)

    def conv_bn_relu(x, w, b, g, be, m, v):
        dn = lax.conv_dimension_numbers(x.shape, w.shape, ('NCH', 'OIH', 'NCH'))
        y = lax.conv_general_dilated(x, w, (1,), [(1, 1)], dimension_numbers=dn)
        y = y + b[None, :, None]
        y = (y - m[None, :, None]) / jnp.sqrt(v[None, :, None] + eps)
        y = y * g[None, :, None] + be[None, :, None]
        return jnp.maximum(y, 0.0)

    x = conv_bn_relu(x, w1, b1, g1, be1, m1, v1)
    x = conv_bn_relu(x, w2, b2, g2, be2, m2, v2)
    return x


def _make_params(key, in_ch, out_ch):
    def conv_bn(k, cin, cout):
        kw, kb, kg, kbe, km, kv = jax.random.split(k, 6)
        w = 0.3 * jax.random.normal(kw, (cout, cin, 3), jnp.float32)
        b = 0.1 * jax.random.normal(kb, (cout,), jnp.float32)
        g = 1.0 + 0.1 * jax.random.normal(kg, (cout,), jnp.float32)
        be = 0.1 * jax.random.normal(kbe, (cout,), jnp.float32)
        m = 0.1 * jax.random.normal(km, (cout,), jnp.float32)
        v = jax.random.uniform(kv, (cout,), jnp.float32, 0.5, 1.5)
        return (w, b, g, be, m, v)
    k1, k2 = jax.random.split(key)
    return conv_bn(k1, in_ch, out_ch) + conv_bn(k2, out_ch, out_ch)


if __name__ == "__main__":
    key = jax.random.PRNGKey(0)

    configs = [
        dict(B=2, in_ch=4, out_ch=8, L=16),     # tiny, matches the module example
        dict(B=6, in_ch=16, out_ch=32, L=129),  # odd L, batch padding, 2-step grid
    ]
    for i, cfg in enumerate(configs):
        kp, kx, key = jax.random.split(key, 3)
        params = _make_params(kp, cfg["in_ch"], cfg["out_ch"])
        x = jax.random.normal(kx, (cfg["B"], cfg["in_ch"], cfg["L"]), jnp.float32)

        out = jax.block_until_ready(down_pallas(x, params))
        ref = _ref_down(x, params)

        assert out.shape == (cfg["B"], cfg["out_ch"], cfg["L"] // 2), out.shape
        err = float(jnp.max(jnp.abs(out.astype(jnp.float32) - ref)))
        scale = max(1.0, float(jnp.max(jnp.abs(ref))))
        # bf16 activations / weights / output -> ~0.4% per stage quantization
        assert err / scale < 3e-2, \
            f"config {i}: normalized err {err / scale:.4g} (abs {err:.4g})"

    print("KERNEL_OK")
</pallas_src>

<mosaic_0001>
module attributes {stable_mosaic.version = 11 : i64} {
  func.func @_down_kernel(%arg0: i32, %arg1: memref<8x128xbf16, #tpu.memory_space<vmem>>, %arg2: memref<3x128x128xbf16, #tpu.memory_space<vmem>>, %arg3: memref<1x128xf32, #tpu.memory_space<vmem>>, %arg4: memref<1x128xf32, #tpu.memory_space<vmem>>, %arg5: memref<3x128x128xbf16, #tpu.memory_space<vmem>>, %arg6: memref<1x128xf32, #tpu.memory_space<vmem>>, %arg7: memref<1x128xf32, #tpu.memory_space<vmem>>, %arg8: memref<8x128xbf16, #tpu.memory_space<vmem>>) attributes {dimension_semantics = [#tpu.dimension_semantics<parallel>], iteration_bounds = array<i64: 2>, scalar_prefetch = 0 : i64, scratch_operands = 0 : i64, tpu.core_type = #tpu.core_type<tc>, window_params = [{transform_indices = @transform_0, window_bounds = array<i64: 8, 128>}, {pipeline_mode = #tpu.pipeline_mode<synchronous>, transform_indices = @transform_1, window_bounds = array<i64: 3, 128, 128>}, {pipeline_mode = #tpu.pipeline_mode<synchronous>, transform_indices = @transform_2, window_bounds = array<i64: 1, 128>}, {pipeline_mode = #tpu.pipeline_mode<synchronous>, transform_indices = @transform_3, window_bounds = array<i64: 1, 128>}, {pipeline_mode = #tpu.pipeline_mode<synchronous>, transform_indices = @transform_4, window_bounds = array<i64: 3, 128, 128>}, {pipeline_mode = #tpu.pipeline_mode<synchronous>, transform_indices = @transform_5, window_bounds = array<i64: 1, 128>}, {pipeline_mode = #tpu.pipeline_mode<synchronous>, transform_indices = @transform_6, window_bounds = array<i64: 1, 128>}, {transform_indices = @transform_7, window_bounds = array<i64: 8, 128>}]} {
    %0 = tpu.iota {dimensions = array<i32: 0>} : vector<8x1xi32>
    %c8_i32 = arith.constant 8 : i32
    %c0_i32 = arith.constant 0 : i32
    %1 = arith.cmpi eq, %c8_i32, %c0_i32 : i32
    %c1_i32 = arith.constant 1 : i32
    %2 = arith.select %1, %c1_i32, %c8_i32 : i32
    %3 = vector.broadcast %2 : i32 to vector<8x1xi32>
    %4 = arith.remsi %0, %3 : vector<8x1xi32>
    %c0_i32_0 = arith.constant 0 : i32
    %5 = vector.broadcast %c0_i32_0 : i32 to vector<8x1xi32>
    %6 = arith.cmpi ne, %4, %5 : vector<8x1xi32>
    %c0_i32_1 = arith.constant 0 : i32
    %7 = vector.broadcast %c0_i32_1 : i32 to vector<8x1xi32>
    %8 = arith.cmpi slt, %4, %7 : vector<8x1xi32>
    %c0_i32_2 = arith.constant 0 : i32
    %9 = arith.cmpi slt, %2, %c0_i32_2 : i32
    %10 = vector.broadcast %9 : i1 to vector<8x1xi1>
    %11 = vector.broadcast %10 : vector<8x1xi1> to vector<8x1xi1>
    %12 = arith.xori %8, %11 : vector<8x1xi1>
    %13 = arith.andi %12, %6 : vector<8x1xi1>
    %14 = vector.broadcast %2 : i32 to vector<8x1xi32>
    %15 = arith.addi %4, %14 : vector<8x1xi32>
    %16 = arith.select %13, %15, %4 : vector<8x1xi1>, vector<8x1xi32>
    %c0_i32_3 = arith.constant 0 : i32
    %17 = vector.broadcast %c0_i32_3 : i32 to vector<8x1xi32>
    %18 = arith.cmpi ne, %16, %17 : vector<8x1xi32>
    %c7_i32 = arith.constant 7 : i32
    %19 = vector.broadcast %c7_i32 : i32 to vector<8x1xi32>
    %20 = arith.cmpi ne, %16, %19 : vector<8x1xi32>
    %c0 = arith.constant 0 : index
    %c0_4 = arith.constant 0 : index
    %21 = vector.load %arg1[%c0, %c0_4] : memref<8x128xbf16, #tpu.memory_space<vmem>>, vector<8x128xbf16>
    %22 = arith.extf %21 : vector<8x128xbf16> to vector<8x128xf32>
    %c1_i32_5 = arith.constant 1 : i32
    %23 = tpu.dynamic_rotate %22 by %c1_i32_5 dim 0 : vector<8x128xf32>, i32 -> vector<8x128xf32>
    %cst = arith.constant 0.000000e+00 : f32
    %24 = vector.shape_cast %18 : vector<8x1xi1> to vector<8x1xi1>
    %25 = vector.broadcast %24 : vector<8x1xi1> to vector<8x128xi1>
    %26 = vector.broadcast %cst : f32 to vector<8x128xf32>
    %27 = arith.select %25, %23, %26 : vector<8x128xi1>, vector<8x128xf32>
    %28 = arith.truncf %27 : vector<8x128xf32> to vector<8x128xbf16>
    %c7_i32_6 = arith.constant 7 : i32
    %29 = tpu.dynamic_rotate %22 by %c7_i32_6 dim 0 : vector<8x128xf32>, i32 -> vector<8x128xf32>
    %cst_7 = arith.constant 0.000000e+00 : f32
    %30 = vector.shape_cast %20 : vector<8x1xi1> to vector<8x1xi1>
    %31 = vector.broadcast %30 : vector<8x1xi1> to vector<8x128xi1>
    %32 = vector.broadcast %cst_7 : f32 to vector<8x128xf32>
    %33 = arith.select %31, %29, %32 : vector<8x128xi1>, vector<8x128xf32>
    %34 = arith.truncf %33 : vector<8x128xf32> to vector<8x128xbf16>
    %c1 = arith.constant 1 : index
    %c0_8 = arith.constant 0 : index
    %c0_9 = arith.constant 0 : index
    %35 = vector.load %arg2[%c1, %c0_8, %c0_9] : memref<3x128x128xbf16, #tpu.memory_space<vmem>>, vector<1x128x128xbf16>
    %36 = vector.shape_cast %35 : vector<1x128x128xbf16> to vector<128x128xbf16>
    %cst_10 = arith.constant dense<0.000000e+00> : vector<8x128xf32>
    %37 = tpu.matmul %21, %36, %cst_10 {dimension_numbers = #tpu.dot_dimension_numbers<[1], [0], [0], [1], [0, 0, 1, 1], [], []>} : vector<8x128xbf16>, vector<128x128xbf16>, vector<8x128xf32> -> vector<8x128xf32>
    %c0_11 = arith.constant 0 : index
    %c0_12 = arith.constant 0 : index
    %c0_13 = arith.constant 0 : index
    %38 = vector.load %arg2[%c0_11, %c0_12, %c0_13] : memref<3x128x128xbf16, #tpu.memory_space<vmem>>, vector<1x128x128xbf16>
    %39 = vector.shape_cast %38 : vector<1x128x128xbf16> to vector<128x128xbf16>
    %cst_14 = arith.constant dense<0.000000e+00> : vector<8x128xf32>
    %40 = tpu.matmul %28, %39, %cst_14 {dimension_numbers = #tpu.dot_dimension_numbers<[1], [0], [0], [1], [0, 0, 1, 1], [], []>} : vector<8x128xbf16>, vector<128x128xbf16>, vector<8x128xf32> -> vector<8x128xf32>
    %41 = arith.addf %37, %40 : vector<8x128xf32>
    %c2 = arith.constant 2 : index
    %c0_15 = arith.constant 0 : index
    %c0_16 = arith.constant 0 : index
    %42 = vector.load %arg2[%c2, %c0_15, %c0_16] : memref<3x128x128xbf16, #tpu.memory_space<vmem>>, vector<1x128x128xbf16>
    %43 = vector.shape_cast %42 : vector<1x128x128xbf16> to vector<128x128xbf16>
    %cst_17 = arith.constant dense<0.000000e+00> : vector<8x128xf32>
    %44 = tpu.matmul %34, %43, %cst_17 {dimension_numbers = #tpu.dot_dimension_numbers<[1], [0], [0], [1], [0, 0, 1, 1], [], []>} : vector<8x128xbf16>, vector<128x128xbf16>, vector<8x128xf32> -> vector<8x128xf32>
    %45 = arith.addf %41, %44 : vector<8x128xf32>
    %c0_18 = arith.constant 0 : index
    %c0_19 = arith.constant 0 : index
    %46 = vector.load %arg3[%c0_18, %c0_19] : memref<1x128xf32, #tpu.memory_space<vmem>>, vector<1x128xf32>
    %47 = vector.broadcast %46 : vector<1x128xf32> to vector<8x128xf32>
    %48 = arith.mulf %45, %47 : vector<8x128xf32>
    %c0_20 = arith.constant 0 : index
    %c0_21 = arith.constant 0 : index
    %49 = vector.load %arg4[%c0_20, %c0_21] : memref<1x128xf32, #tpu.memory_space<vmem>>, vector<1x128xf32>
    %50 = vector.broadcast %49 : vector<1x128xf32> to vector<8x128xf32>
    %51 = arith.addf %48, %50 : vector<8x128xf32>
    %cst_22 = arith.constant 0.000000e+00 : f32
    %52 = vector.broadcast %cst_22 : f32 to vector<8x128xf32>
    %53 = arith.maximumf %51, %52 : vector<8x128xf32>
    %54 = arith.truncf %53 : vector<8x128xf32> to vector<8x128xbf16>
    %55 = arith.extf %54 : vector<8x128xbf16> to vector<8x128xf32>
    %c1_i32_23 = arith.constant 1 : i32
    %56 = tpu.dynamic_rotate %55 by %c1_i32_23 dim 0 : vector<8x128xf32>, i32 -> vector<8x128xf32>
    %cst_24 = arith.constant 0.000000e+00 : f32
    %57 = vector.shape_cast %18 : vector<8x1xi1> to vector<8x1xi1>
    %58 = vector.broadcast %57 : vector<8x1xi1> to vector<8x128xi1>
    %59 = vector.broadcast %cst_24 : f32 to vector<8x128xf32>
    %60 = arith.select %58, %56, %59 : vector<8x128xi1>, vector<8x128xf32>
    %61 = arith.truncf %60 : vector<8x128xf32> to vector<8x128xbf16>
    %c7_i32_25 = arith.constant 7 : i32
    %62 = tpu.dynamic_rotate %55 by %c7_i32_25 dim 0 : vector<8x128xf32>, i32 -> vector<8x128xf32>
    %cst_26 = arith.constant 0.000000e+00 : f32
    %63 = vector.shape_cast %20 : vector<8x1xi1> to vector<8x1xi1>
    %64 = vector.broadcast %63 : vector<8x1xi1> to vector<8x128xi1>
    %65 = vector.broadcast %cst_26 : f32 to vector<8x128xf32>
    %66 = arith.select %64, %62, %65 : vector<8x128xi1>, vector<8x128xf32>
    %67 = arith.truncf %66 : vector<8x128xf32> to vector<8x128xbf16>
    %c1_27 = arith.constant 1 : index
    %c0_28 = arith.constant 0 : index
    %c0_29 = arith.constant 0 : index
    %68 = vector.load %arg5[%c1_27, %c0_28, %c0_29] : memref<3x128x128xbf16, #tpu.memory_space<vmem>>, vector<1x128x128xbf16>
    %69 = vector.shape_cast %68 : vector<1x128x128xbf16> to vector<128x128xbf16>
    %cst_30 = arith.constant dense<0.000000e+00> : vector<8x128xf32>
    %70 = tpu.matmul %54, %69, %cst_30 {dimension_numbers = #tpu.dot_dimension_numbers<[1], [0], [0], [1], [0, 0, 1, 1], [], []>} : vector<8x128xbf16>, vector<128x128xbf16>, vector<8x128xf32> -> vector<8x128xf32>
    %c0_31 = arith.constant 0 : index
    %c0_32 = arith.constant 0 : index
    %c0_33 = arith.constant 0 : index
    %71 = vector.load %arg5[%c0_31, %c0_32, %c0_33] : memref<3x128x128xbf16, #tpu.memory_space<vmem>>, vector<1x128x128xbf16>
    %72 = vector.shape_cast %71 : vector<1x128x128xbf16> to vector<128x128xbf16>
    %cst_34 = arith.constant dense<0.000000e+00> : vector<8x128xf32>
    %73 = tpu.matmul %61, %72, %cst_34 {dimension_numbers = #tpu.dot_dimension_numbers<[1], [0], [0], [1], [0, 0, 1, 1], [], []>} : vector<8x128xbf16>, vector<128x128xbf16>, vector<8x128xf32> -> vector<8x128xf32>
    %74 = arith.addf %70, %73 : vector<8x128xf32>
    %c2_35 = arith.constant 2 : index
    %c0_36 = arith.constant 0 : index
    %c0_37 = arith.constant 0 : index
    %75 = vector.load %arg5[%c2_35, %c0_36, %c0_37] : memref<3x128x128xbf16, #tpu.memory_space<vmem>>, vector<1x128x128xbf16>
    %76 = vector.shape_cast %75 : vector<1x128x128xbf16> to vector<128x128xbf16>
    %cst_38 = arith.constant dense<0.000000e+00> : vector<8x128xf32>
    %77 = tpu.matmul %67, %76, %cst_38 {dimension_numbers = #tpu.dot_dimension_numbers<[1], [0], [0], [1], [0, 0, 1, 1], [], []>} : vector<8x128xbf16>, vector<128x128xbf16>, vector<8x128xf32> -> vector<8x128xf32>
    %78 = arith.addf %74, %77 : vector<8x128xf32>
    %c0_39 = arith.constant 0 : index
    %c0_40 = arith.constant 0 : index
    %79 = vector.load %arg6[%c0_39, %c0_40] : memref<1x128xf32, #tpu.memory_space<vmem>>, vector<1x128xf32>
    %80 = vector.broadcast %79 : vector<1x128xf32> to vector<8x128xf32>
    %81 = arith.mulf %78, %80 : vector<8x128xf32>
    %c0_41 = arith.constant 0 : index
    %c0_42 = arith.constant 0 : index
    %82 = vector.load %arg7[%c0_41, %c0_42] : memref<1x128xf32, #tpu.memory_space<vmem>>, vector<1x128xf32>
    %83 = vector.broadcast %82 : vector<1x128xf32> to vector<8x128xf32>
    %84 = arith.addf %81, %83 : vector<8x128xf32>
    %cst_43 = arith.constant 0.000000e+00 : f32
    %85 = vector.broadcast %cst_43 : f32 to vector<8x128xf32>
    %86 = arith.maximumf %84, %85 : vector<8x128xf32>
    %87 = arith.truncf %86 : vector<8x128xf32> to vector<8x128xbf16>
    %c0_44 = arith.constant 0 : index
    %c0_45 = arith.constant 0 : index
    %88 = vector.load %arg8[%c0_44, %c0_45] : memref<8x128xbf16, #tpu.memory_space<vmem>>, vector<8x128xbf16>
    tpu.vector_store %arg8[%c0_44, %c0_45], %87 {strides = array<i32>} : memref<8x128xbf16, #tpu.memory_space<vmem>>, vector<8x128xbf16>,
    return
  }
  func.func @transform_0(%arg0: i32) -> (i32, i32) {
    %c0_i32 = arith.constant 0 : i32
    %c0_i32_0 = arith.constant 0 : i32
    return %arg0, %c0_i32 : i32, i32
  }
  func.func @transform_1(%arg0: i32) -> (i32, i32, i32) {
    %c0_i32 = arith.constant 0 : i32
    %c0_i32_0 = arith.constant 0 : i32
    %c0_i32_1 = arith.constant 0 : i32
    %c0_i32_2 = arith.constant 0 : i32
    return %c0_i32, %c0_i32_0, %c0_i32_1 : i32, i32, i32
  }
  func.func @transform_2(%arg0: i32) -> (i32, i32) {
    %c0_i32 = arith.constant 0 : i32
    %c0_i32_0 = arith.constant 0 : i32
    %c0_i32_1 = arith.constant 0 : i32
    return %c0_i32, %c0_i32_0 : i32, i32
  }
  func.func @transform_3(%arg0: i32) -> (i32, i32) {
    %c0_i32 = arith.constant 0 : i32
    %c0_i32_0 = arith.constant 0 : i32
    %c0_i32_1 = arith.constant 0 : i32
    return %c0_i32, %c0_i32_0 : i32, i32
  }
  func.func @transform_4(%arg0: i32) -> (i32, i32, i32) {
    %c0_i32 = arith.constant 0 : i32
    %c0_i32_0 = arith.constant 0 : i32
    %c0_i32_1 = arith.constant 0 : i32
    %c0_i32_2 = arith.constant 0 : i32
    return %c0_i32, %c0_i32_0, %c0_i32_1 : i32, i32, i32
  }
  func.func @transform_5(%arg0: i32) -> (i32, i32) {
    %c0_i32 = arith.constant 0 : i32
    %c0_i32_0 = arith.constant 0 : i32
    %c0_i32_1 = arith.constant 0 : i32
    return %c0_i32, %c0_i32_0 : i32, i32
  }
  func.func @transform_6(%arg0: i32) -> (i32, i32) {
    %c0_i32 = arith.constant 0 : i32
    %c0_i32_0 = arith.constant 0 : i32
    %c0_i32_1 = arith.constant 0 : i32
    return %c0_i32, %c0_i32_0 : i32, i32
  }
  func.func @transform_7(%arg0: i32) -> (i32, i32) {
    %c0_i32 = arith.constant 0 : i32
    %c0_i32_0 = arith.constant 0 : i32
    return %arg0, %c0_i32 : i32, i32
  }
}

</mosaic_0001>

<bundles_post_ra>
// kernel: tpu_custom_call.1
= control target key start
LH: loop header
LB: loop body
LE: loop exit
PB: predicated region body
PF: predicated region fallthrough
CT: control target
= control target key end

     0   :  { %12 = vsyncpa [#allocation3], 0  ;;  %s2078_s0 = inlined_call_operand.hbm [shape: bf16[16,128], index: 0, kind: input, shape index: {}]   ;;  %s2079_s1 = inlined_call_operand.hbm [shape: bf16[3,128,128], index: 1, kind: input, shape index: {}]   ;;  %s2080_s2 = inlined_call_operand.vmem [shape: f32[1,128], index: 2, kind: input, shape index: {}]   ;;  %s2081_s3 = inlined_call_operand.vmem [shape: f32[1,128], index: 3, kind: input, shape index: {}]   ;;  %s2082_s4 = inlined_call_operand.hbm [shape: bf16[3,128,128], index: 4, kind: input, shape index: {}]   ;;  %s2083_s5 = inlined_call_operand.vmem [shape: f32[1,128], index: 5, kind: input, shape index: {}]   ;;  %s2084_s6 = inlined_call_operand.vmem [shape: f32[1,128], index: 6, kind: input, shape index: {}]   ;;  %s2085_s7 = inlined_call_operand.hbm [shape: bf16[16,128], index: 7, kind: output, shape index: {}]  }
   0x1   :  { %14 = vsyncpa [#allocation3 + $0x1], 0 }
   0x2   :  { %15 = vsyncpa [#allocation6], 0 }
   0x3   :  { %16 = vsyncpa [#allocation4], 0 }
   0x4   :  { %18 = vsyncpa [#allocation4 + $0x1], 0  ;;  %s1724_s24 = smov 0   ;;  %s1726_s25 = smov 0  }
   0x5   :  { %s1728_s26 = smov 0   ;;  %s1730_s27 = smov 0  }
   0x6 LB: > { %s1745_s28 = sadd.s32 4294967295, %s1674_s27   ;;  %s1129_s29 = sadd.s32 4294967294, %s1674_s27   ;;  %s1674_s27 = sphi %s1730_s27, %s2109_s27   ;;  %s1670_s26 = sphi %s1728_s26, %s2108_s26   ;;  %s1666_s25 = sphi %s1726_s25, %s2107_s25   ;;  %s1662_s24 = sphi %s1724_s24, %s2106_s24  }
   0x7   : > { %p44_p0 = scmp.ne.s32.totalorder %s1666_s25, %s1662_s24  ;;  %p2086_p1 = scmp.eq.s32.totalorder %s1745_s28, 0 }
   0x8   : > { %p200_p3 = scmp.eq.s32.totalorder %s1129_s29, 1  ;;  %p1130_p5 = scmp.ge.s32.totalorder %s1674_s27, 1 }
   0x9   : > { %p1754_p4 = por %p2086_p1, %p44_p0  ;;  %p207_p7 = scmp.lt.s32.totalorder %s1674_s27, 3 }
   0xa   : > { %p1759_p6 = por %p200_p3, %p44_p0  ;;  %s1676_s10 = smov [#allocation5]  }
   0xb   : > { %s2089_s30 = scalar_select %p1754_p4, 1, 0 }
   0xc   : > { %s2090_s8 = scalar_select %p1759_p6, 1, 0 }
   0xd   : > { %p1764_p8 = pnand %p1130_p5, %p207_p7  ;;  %s219_s11 = sshll.u32 %s1676_s10, 4  ;;  %s1768_s11 = int_to_ptr.vmem [resolvable:$true] %s219_s11 }
   0xe   : > { %s1677_s13 = smov [#allocation7]   ;;  %s1518_s17 = scalar_lea.hbm %s2079_s1, 3072 }
   0xf   : > { %p1411_p9 = pneg %p1764_p8  ;;  %s238_s14 = sshll.u32 %s1677_s13, 4  ;;  %s1779_s14 = int_to_ptr.vmem [resolvable:$true] %s238_s14 }
  0x10   : > { %p1519_p12 = scmp.ne.s32.totalorder %s2079_s1, %s1518_s17  ;;  %p1525_p5 = scmp.lt.u32.totalorder %s1518_s17, %s2079_s1 }
  0x11   : > { %p1775_p11 = pnand %p1411_p9, %p2086_p1 }
  0x13   : > { %p1520_p13 = pneg %p1775_p11 }
  0x15   : > { %p1521_p0 = pnand %p1520_p13, %p1519_p12 }
  0x17   : > { %p1522_p3 = pneg %p1521_p0 }
  0x19   : > { %p1527_p7 = pnand %p1525_p5, %p1522_p3 }
  0x1b   : > { %1530 = shalt.err (!%p1527_p7)
}
  0x1c   : > { %s1531_s22 = scalar_lea.vmem %s1768_s11, 3072  ;;  %p1539_p2 = scmp.lt.s32.totalorder %s1768_s11, %s1768_s11 }
  0x1d   : > { %p1532_p9 = scmp.ne.s32.totalorder %s1768_s11, %s1531_s22  ;;  %p1540_p12 = scmp.lt.s32.totalorder %s1531_s22, %s1531_s22 }
  0x1f   : > { %p1534_p10 = pnand %p1532_p9, %p1520_p13  ;;  %p1541_p0 = por %p1540_p12, %p1539_p2 }
  0x21   : > { %p1535_p1 = pneg %p1534_p10 }
  0x23   : > { %p1542_p6 = pnand %p1541_p0, %p1535_p1 }
  0x25   : > { %1545 = shalt.err (!%p1542_p6)
}
  0x26   : > { %s1678_s23 = smov 64   ;;  %s1679_s29 = smov 4  }
  0x27   : > { %1414 = dma.hbm_to_vmem [thread:$0]  (!%p1775_p11), %s2079_s1, 3072, %s1768_s11, [#allocation6], %s1678_s23, %s1678_s23, %s1679_s29  }
  0x28   : > { %s1546_s17 = scalar_lea.hbm %s2082_s4, 3072 }
  0x29   : > { %p1547_p2 = scmp.ne.s32.totalorder %s2082_s4, %s1546_s17  ;;  %p1553_p10 = scmp.lt.u32.totalorder %s1546_s17, %s2082_s4 }
  0x2b   : > { %p1549_p1 = pnand %p1547_p2, %p1520_p13 }
  0x2d   : > { %p1550_p6 = pneg %p1549_p1 }
  0x2f   : > { %p1555_p3 = pnand %p1553_p10, %p1550_p6 }
  0x31   : > { %1558 = shalt.err (!%p1555_p3)
}
  0x32   : > { %s1559_s11 = scalar_lea.vmem %s1779_s14, 3072  ;;  %p1567_p12 = scmp.lt.s32.totalorder %s1779_s14, %s1779_s14 }
  0x33   : > { %p1560_p5 = scmp.ne.s32.totalorder %s1779_s14, %s1559_s11  ;;  %p1568_p0 = scmp.lt.s32.totalorder %s1559_s11, %s1559_s11 }
  0x35   : > { %p1562_p7 = pnand %p1560_p5, %p1520_p13  ;;  %p1569_p2 = por %p1568_p0, %p1567_p12 }
  0x37   : > { %p1563_p9 = pneg %p1562_p7 }
  0x39   : > { %p1570_p1 = pnand %p1569_p2, %p1563_p9 }
  0x3b   : > { %1573 = shalt.err (!%p1570_p1)
}
  0x3c   : > { %1417 = dma.hbm_to_vmem [thread:$0]  (!%p1775_p11), %s2082_s4, 3072, %s1779_s14, [#allocation6], %s1678_s23, %s1678_s23, %s1679_s29  }
  0x3d   : > { %s1834_s13 = sadd.s32 1, %s1674_s27   ;;  %s31_s12 = sadd.s32 1, %s1670_s26 }
  0x3e   : > { %s28_s15 = ssub.s32 %s1674_s27, %s1834_s13  ;;  %p38_p13 = scmp.ne.s32.totalorder %s1670_s26, %s1666_s25 }
  0x3f   : > { %p29_p6 = scmp.eq.s32.totalorder %s28_s15, 0  ;;  %p39_p10 = scmp.eq.s32.totalorder %s1674_s27, 0 }
  0x40   : > { %p2093_p3 = scmp.eq.s32.totalorder %s1745_s28, 1  ;;  %p1428_p7 = scmp.lt.s32.totalorder %s1674_s27, 2 }
  0x41   : > { %s1850_s17 = scalar_select %p29_p6, %s1670_s26, %s31_s12  }
  0x42   : > { %p1844_p5 = por %p2093_p3, %p38_p13  ;;  %p40_p9 = por %p39_p10, %p38_p13 }
  0x43   : > { %s258_s18 = sand.u32 1, %s1670_s26   ;;  %s1135_s14 = sshll.u32 %s1674_s27, 6 }
  0x44   : > { %s2094_s16 = scalar_select %p1844_p5, 1, 0 }
  0x45   : > { %s1134_s19 = sshll.u32 %s258_s18, 2  ;;  %s1857_s20 = scalar_lea.hbm %s2078_s0, %s1135_s14 }
  0x46   : > { %s262_s21 = scalar_lea.vmem [#allocation2], %s1134_s19  ;;  %p1861_p11 = pnand %p1428_p7, %p40_p9 }
  0x47   : > { %s269_s11 = sshll.u32 %s262_s21, 4  ;;  %s259_s10 = scalar_lea.sflag [#allocation3], %s258_s18  ;;  %s1859_s11 = int_to_ptr.vmem [resolvable:$true] %s269_s11 }
  0x48   : > { %s1574_s12 = scalar_lea.hbm %s1857_s20, 64  ;;  %p1576_p0 = pneg %p1861_p11 }
  0x49   : > { %p1575_p12 = scmp.ne.s32.totalorder %s1857_s20, %s1574_s12  ;;  %s1579_s14 = scalar_lea.hbm %s2078_s0, 128 }
  0x4a   : > { %p1580_p13 = scmp.lt.u32.totalorder %s1857_s20, %s2078_s0  ;;  %p1581_p6 = scmp.lt.u32.totalorder %s1579_s14, %s1574_s12 }
  0x4b   : > { %p1577_p2 = pnand %p1576_p0, %p1575_p12  ;;  %p1583_p3 = scmp.lt.u32.totalorder %s1574_s12, %s1857_s20 }
  0x4c   : > { %p1582_p10 = por %p1581_p6, %p1580_p13 }
  0x4d   : > { %p1578_p1 = pneg %p1577_p2 }
  0x4e   : > { %p1584_p7 = por %p1583_p3, %p1582_p10 }
  0x50   : > { %p1585_p9 = pnand %p1584_p7, %p1578_p1 }
  0x52   : > { %1588 = shalt.err (!%p1585_p9)
}
  0x53   : > { %s1589_s18 = scalar_lea.vmem %s1859_s11, 64  ;;  %s1680_s21 = smov [#allocation2]  }
  0x54   : > { %p1590_p12 = scmp.ne.s32.totalorder %s1859_s11, %s1589_s18  ;;  %s1594_s15 = sshll.u32 %s1680_s21, 4  ;;  %s1595_s15 = int_to_ptr.vmem [resolvable:$false] %s1594_s15 }
  0x55   : > { %s1596_s19 = scalar_lea.vmem %s1595_s15, 128  ;;  %p1597_p4 = scmp.lt.s32.totalorder %s1859_s11, %s1595_s15 }
  0x56   : > { %p1592_p2 = pnand %p1590_p12, %p1576_p0  ;;  %p1598_p13 = scmp.lt.s32.totalorder %s1596_s19, %s1589_s18 }
  0x58   : > { %p1593_p5 = pneg %p1592_p2  ;;  %p1599_p6 = por %p1598_p13, %p1597_p4 }
  0x5a   : > { %p1600_p10 = pnand %p1599_p6, %p1593_p5 }
  0x5c   : > { %1603 = shalt.err (!%p1600_p10)
}
  0x5d   : > { %1421 = dma.hbm_to_vmem [thread:$0]  (!%p1861_p11), %s1857_s20, 64, %s1859_s11, %s259_s10  }
  0x5e   : > { %278 = sbr.rel (%p1764_p8) target bundleno = 723 (0x2d3), region = 48  ;;  %s1893_s12 = sand.u32 (!%p1764_p8), 1, %s1666_s25  }
  0x5f   : > { %s1137_s14 = sshll.u32 (!%p1764_p8), %s1893_s12, 2  ;;  %s281_s23 = scalar_lea.sflag (!%p1764_p8), [#allocation3], %s1893_s12 }
  0x60   : > { %s284_s29 = scalar_lea.vmem (!%p1764_p8), [#allocation2], %s1137_s14  ;;  %p2096_p4 = scmp.ne.s32.totalorder (!%p1764_p8), %s2089_s30, 0 }
  0x65   : > { %1649 = dma.done.wait (%p2096_p4), %s281_s23, 64  }
  0x66   : > { %1651 = vsyncadd (%p2096_p4), %s281_s23, 4294967232  ;;  %p2097_p5 = scmp.eq.s32.totalorder %s1745_s28, 0 }
  0x68   : > { %1653 = dma.done.wait (%p2097_p5), [#allocation6], 6144   ;;  %p2098_p8 = pmov %p2097_p5 }
  0x69   : > { %v1681_v0 = vmov 0.0   ;;  %vm1682_vm0 = vmmov 0   ;;  %v1470_v1 = vld [vmem:[#allocation5] sm:$0xff]   ;;  %v1471_v2 = vld [vmem:[#allocation5 + $0x8] sm:$0xff]   ;;  %v1472_v3 = vld [vmem:[#allocation5 + $0x10] sm:$0xff]   ;;  %v324_v5 = vlaneseq  ;;  %s1206_s15 = sshll.u32 %s1745_s28, 6 }
  0x6a   : > { %1655 = vsyncadd (%p2098_p8), [#allocation6], 4294961152  ;;  %1263 = vmatprep.subr.bf16.mxu0 %v1681_v0  ;;  %1279 = vmatprep.mubr.msk.bf16.mxu0 %vm1682_vm0, %v1681_v0  ;;  %v1473_v4 = vld [vmem:[#allocation5 + $0x18] sm:$0xff]   ;;  %v1474_v6 = vld [vmem:[#allocation5 + $0x20] sm:$0xff]   ;;  %s322_s19 = scalar_lea.vmem [#allocation8], %s1137_s14  ;;  %s2034_s9 = scalar_lea.hbm %s2085_s7, %s1206_s15 }
  0x6b   : > { %1323 = vmatprep.subr.bf16.mxu1 %v1681_v0  ;;  %1339 = vmatprep.mubr.msk.bf16.mxu1 %vm1682_vm0, %v1681_v0  ;;  %v1917_v7 = vshrl.u32 %v324_v5, 7  ;;  %v1475_v8 = vld [vmem:[#allocation5 + $0x28] sm:$0xff]   ;;  %v1919_v9 = vld [vmem:[%s284_s29] sm:$0xf]  ;;  %v1476_v12 = vld [vmem:[#allocation5 + $0x30] sm:$0xff]   ;;  %s1040_s23 = sshll.u32 %s322_s19, 4  ;;  %s2036_s23 = int_to_ptr.vmem [resolvable:$true] %s1040_s23 }
  0x6c   : > { %1264 = vmatpush3.bf16.msra.mxu0 %v1470_v1  ;;  %v341_v11 = vunpack.c.l.bf16 %v1919_v9  ;;  %v1494_v15 = vld [vmem:[#allocation7] sm:$0xff]   ;;  %v1477_v16 = vld [vmem:[#allocation5 + $0x38] sm:$0xff]   ;;  %v1495_v17 = vld [vmem:[#allocation7 + $0x8] sm:$0xff]   ;;  %s1027_s20 = scalar_lea.sflag [#allocation4], %s1893_s12  ;;  %s1604_s11 = scalar_lea.vmem %s2036_s23, 64 }
  0x6d   : > { %1265 = vmatprep.subr.bf16.mxu0 %v1681_v0  ;;  %v330_v10 = vand.u32 7, %v1917_v7  ;;  %1324 = vmatpush3.bf16.msra.mxu1 %v1494_v15  ;;  %v1478_v19 = vld [vmem:[#allocation5 + $0x40] sm:$0xff]   ;;  %v1496_v20 = vld [vmem:[#allocation7 + $0x10] sm:$0xff]   ;;  %v1479_v21 = vld [vmem:[#allocation5 + $0x48] sm:$0xff]   ;;  %p1605_p11 = scmp.ne.s32.totalorder %s2036_s23, %s1604_s11  ;;  %p2103_p0 = scmp.ne.s32.totalorder %s2094_s16, 0 }
  0x6e   : > { %v342_v14 = vrot.slane %v341_v11, 7  ;;  %1325 = vmatprep.subr.bf16.mxu1 %v1681_v0  ;;  %v1497_v22 = vld [vmem:[#allocation7 + $0x18] sm:$0xff]   ;;  %v1480_v23 = vld [vmem:[#allocation5 + $0x50] sm:$0xff]   ;;  %v1498_v24 = vld [vmem:[#allocation7 + $0x20] sm:$0xff]   ;;  %v347_v38 = vrot.slane %v341_v11, 1  ;;  %s1683_s28 = smov [#allocation8]  }
  0x6f   : > { %vm1927_vm1 = vcmp.ne.s32.totalorder %v330_v10, 0  ;;  %v1481_v25 = vld [vmem:[#allocation5 + $0x58] sm:$0xff]   ;;  %v1499_v26 = vld [vmem:[#allocation7 + $0x28] sm:$0xff]   ;;  %v1482_v27 = vld [vmem:[#allocation5 + $0x60] sm:$0xff]   ;;  %vm1973_vm3 = vcmp.ne.s32.totalorder %v330_v10, 7  ;;  %p1606_p1 = pnand %p1605_p11, %p2103_p0  ;;  %s1608_s14 = sshll.u32 %s1683_s28, 4  ;;  %s1609_s14 = int_to_ptr.vmem [resolvable:$false] %s1608_s14 }
  0x70   : > { %1266 = vmatpush3.bf16.msra.mxu0 %v1471_v2  ;;  %vm1149_vm2 = vmpackc.low %vm1927_vm1, %vm1927_vm1  ;;  %v1150_v18 = vpack.c.bf16 %v342_v14, %v342_v14  ;;  %v1483_v28 = vld [vmem:[#allocation5 + $0x68] sm:$0xff]   ;;  %v1484_v29 = vld [vmem:[#allocation5 + $0x70] sm:$0xff]   ;;  %v1169_v41 = vpack.c.bf16 %v347_v38, %v347_v38  ;;  %s1610_s22 = scalar_lea.vmem %s1609_s14, 128  ;;  %p1611_p7 = scmp.lt.s32.totalorder %s2036_s23, %s1609_s14 }
  0x71   : > { %1267 = vmatprep.subr.bf16.mxu0 %v1681_v0  ;;  %1326 = vmatpush3.bf16.msra.mxu1 %v1495_v17  ;;  %v1485_v30 = vld [vmem:[#allocation5 + $0x78] sm:$0xff]   ;;  %v1486_v31 = vld [vmem:[#allocation5 + $0x80] sm:$0xff]   ;;  %v1487_v32 = vld [vmem:[#allocation5 + $0x88] sm:$0xff]   ;;  %p1607_p3 = pneg %p1606_p1  ;;  %p1612_p9 = scmp.lt.s32.totalorder %s1610_s22, %s1604_s11 }
  0x72   : > { %1327 = vmatprep.subr.bf16.mxu1 %v1681_v0  ;;  %v1488_v33 = vld [vmem:[#allocation5 + $0x90] sm:$0xff]   ;;  %v1489_v34 = vld [vmem:[#allocation5 + $0x98] sm:$0xff]   ;;  %v1490_v35 = vld [vmem:[#allocation5 + $0xa0] sm:$0xff]  }
  0x73   : > { %v1491_v36 = vld [vmem:[#allocation5 + $0xa8] sm:$0xff]   ;;  %v1492_v37 = vld [vmem:[#allocation5 + $0xb0] sm:$0xff]   ;;  %v1493_v39 = vld [vmem:[#allocation5 + $0xb8] sm:$0xff]   ;;  %p1613_p12 = por %p1612_p9, %p1611_p7 }
  0x74   : > { %1268 = vmatpush3.bf16.msra.mxu0 %v1472_v3  ;;  %vm1168_vm4 = vmpackc.low %vm1973_vm3, %vm1973_vm3  ;;  %v1500_v42 = vld [vmem:[#allocation7 + $0x30] sm:$0xff]   ;;  %v1501_v43 = vld [vmem:[#allocation7 + $0x38] sm:$0xff]  }
  0x75   : > { %1269 = vmatprep.subr.bf16.mxu0 %v1681_v0  ;;  %1328 = vmatpush3.bf16.msra.mxu1 %v1496_v20  ;;  %v1171_v44 = vld [vmem:[%s2080_s2] ss:$0 sm:$0xff]  ;;  %v1502_v54 = vld [vmem:[#allocation7 + $0x40] sm:$0xff]   ;;  %v1503_v56 = vld [vmem:[#allocation7 + $0x48] sm:$0xff]   ;;  %p1614_p2 = pnand %p1613_p12, %p1607_p3 }
  0x76   : > { %1329 = vmatprep.subr.bf16.mxu1 %v1681_v0  ;;  %v1172_v46 = vld [vmem:[%s2081_s3] ss:$0 sm:$0xff]  ;;  %v1504_v57 = vld [vmem:[#allocation7 + $0x50] sm:$0xff]   ;;  %v1506_v59 = vld [vmem:[#allocation7 + $0x60] sm:$0xff]  }
  0x77   : > { %v1505_v58 = vld [vmem:[#allocation7 + $0x58] sm:$0xff]   ;;  %v1507_v60 = vld [vmem:[#allocation7 + $0x68] sm:$0xff]   ;;  %v1508_v61 = vld [vmem:[#allocation7 + $0x70] sm:$0xff]  }
  0x78   : > { %1270 = vmatpush3.bf16.msra.mxu0 %v1473_v4  ;;  %v1509_v62 = vld [vmem:[#allocation7 + $0x78] sm:$0xff]   ;;  %v1510_v63 = vld [vmem:[#allocation7 + $0x80] sm:$0xff]   ;;  %v1511_v2 = vld [vmem:[#allocation7 + $0x88] sm:$0xff]  }
  0x79   : > { %1271 = vmatprep.subr.bf16.mxu0 %v1681_v0  ;;  %1330 = vmatpush3.bf16.msra.mxu1 %v1497_v22  ;;  %v1512_v3 = vld [vmem:[#allocation7 + $0x90] sm:$0xff]   ;;  %v1513_v4 = vld [vmem:[#allocation7 + $0x98] sm:$0xff]   ;;  %v1514_v5 = vld [vmem:[#allocation7 + $0xa0] sm:$0xff]  }
  0x7a   : > { %1331 = vmatprep.subr.bf16.mxu1 %v1681_v0  ;;  %v1516_v7 = vld [vmem:[#allocation7 + $0xb0] sm:$0xff]   ;;  %v1203_v11 = vld [vmem:[%s2083_s5] ss:$0 sm:$0xff] }
  0x7b   : > { %v1204_v13 = vld [vmem:[%s2084_s6] ss:$0 sm:$0xff] }
  0x7c   : > { %1272 = vmatpush3.bf16.msra.mxu0 %v1474_v6  ;;  %v1515_v6 = vld [vmem:[#allocation7 + $0xa8] sm:$0xff]  }
  0x7d   : > { %1273 = vmatprep.subr.bf16.mxu0 %v1681_v0  ;;  %1332 = vmatpush3.bf16.msra.mxu1 %v1498_v24 }
  0x7e   : > { %1333 = vmatprep.subr.bf16.mxu1 %v1681_v0 }
  0x80   : > { %1274 = vmatpush3.bf16.msra.mxu0 %v1475_v8  ;;  %v1517_v8 = vld [vmem:[#allocation7 + $0xb8] sm:$0xff]  }
  0x81   : > { %1275 = vmatprep.subr.bf16.mxu0 %v1681_v0  ;;  %1334 = vmatpush3.bf16.msra.mxu1 %v1499_v26 }
  0x82   : > { %1335 = vmatprep.subr.bf16.mxu1 %v1681_v0 }
  0x84   : > { %1276 = vmatpush3.bf16.msra.mxu0 %v1476_v12 }
  0x85   : > { %1277 = vmatprep.subr.bf16.mxu0 %v1681_v0  ;;  %1336 = vmatpush3.bf16.msra.mxu1 %v1500_v42 }
  0x86   : > { %1337 = vmatprep.subr.bf16.mxu1 %v1681_v0 }
  0x88   : > { %1278 = vmatpush3.bf16.msra.mxu0 %v1477_v16 }
  0x89   : > { %1283 = vmatprep.subr.bf16.mxu0 %v1681_v0  ;;  %1338 = vmatpush3.bf16.msra.mxu1 %v1501_v43 }
  0x8a   : > { %1343 = vmatprep.subr.bf16.mxu1 %v1681_v0 }
  0x8b   : > { %1280 = vmatmul.mubr.msk.bf16.vlgmr.msra.gmra.mrb[0].mxu0 %vm1149_vm2, %v1150_v18 }
  0x8c   : > { %1284 = vmatpush3.bf16.msra.mxu0 %v1478_v19  ;;  %1299 = vmatprep.mubr.msk.bf16.mxu0 %vm1682_vm0, %v1681_v0 }
  0x8d   : > { %1285 = vmatprep.subr.bf16.mxu0 %v1681_v0 }
  0x90   : > { %1286 = vmatpush3.bf16.msra.mxu0 %v1479_v21 }
  0x91   : > { %1287 = vmatprep.subr.bf16.mxu0 %v1681_v0 }
  0x94   : > { %1288 = vmatpush3.bf16.msra.mxu0 %v1480_v23 }
  0x95   : > { %1289 = vmatprep.subr.bf16.mxu0 %v1681_v0 }
  0x98   : > { %1290 = vmatpush3.bf16.msra.mxu0 %v1481_v25 }
  0x99   : > { %1291 = vmatprep.subr.bf16.mxu0 %v1681_v0 }
  0x9c   : > { %1292 = vmatpush3.bf16.msra.mxu0 %v1482_v27 }
  0x9d   : > { %1293 = vmatprep.subr.bf16.mxu0 %v1681_v0 }
  0xa0   : > { %1294 = vmatpush3.bf16.msra.mxu0 %v1483_v28 }
  0xa1   : > { %1295 = vmatprep.subr.bf16.mxu0 %v1681_v0 }
  0xa4   : > { %1296 = vmatpush3.bf16.msra.mxu0 %v1484_v29 }
  0xa5   : > { %1297 = vmatprep.subr.bf16.mxu0 %v1681_v0 }
  0xa8   : > { %1298 = vmatpush3.bf16.msra.mxu0 %v1485_v30 }
  0xa9   : > { %1303 = vmatprep.subr.bf16.mxu0 %v1681_v0 }
  0xab   : > { %1300 = vmatmul.mubr.bf16.vlgmr.msra.gmra.mrb[0].mxu0 %v1919_v9 }
  0xac   : > { %1304 = vmatpush3.bf16.msra.mxu0 %v1486_v31  ;;  %1319 = vmatprep.mubr.msk.bf16.mxu0 %vm1682_vm0, %v1681_v0 }
  0xad   : > { %1305 = vmatprep.subr.bf16.mxu0 %v1681_v0 }
  0xb0   : > { %1306 = vmatpush3.bf16.msra.mxu0 %v1487_v32 }
  0xb1   : > { %1307 = vmatprep.subr.bf16.mxu0 %v1681_v0 }
  0xb4   : > { %1308 = vmatpush3.bf16.msra.mxu0 %v1488_v33 }
  0xb5   : > { %1309 = vmatprep.subr.bf16.mxu0 %v1681_v0 }
  0xb8   : > { %1310 = vmatpush3.bf16.msra.mxu0 %v1489_v34 }
  0xb9   : > { %1311 = vmatprep.subr.bf16.mxu0 %v1681_v0 }
  0xbc   : > { %1312 = vmatpush3.bf16.msra.mxu0 %v1490_v35 }
  0xbd   : > { %1313 = vmatprep.subr.bf16.mxu0 %v1681_v0 }
  0xc0   : > { %1314 = vmatpush3.bf16.msra.mxu0 %v1491_v36 }
  0xc1   : > { %1315 = vmatprep.subr.bf16.mxu0 %v1681_v0 }
  0xc4   : > { %1316 = vmatpush3.bf16.msra.mxu0 %v1492_v37 }
  0xc5   : > { %1317 = vmatprep.subr.bf16.mxu0 %v1681_v0 }
  0xc8   : > { %1318 = vmatpush3.bf16.msra.mxu0 %v1493_v39 }
  0xcb   : > { %1320 = vmatmul.mubr.msk.bf16.vlgmr.msra.gmra.mrb[0].mxu0 %vm1168_vm4, %v1169_v41 }
 0x19e   : > { %v660_v45 = vpop.f32.mrb[0].mxu0 }
 0x19f   : > { %v674_v47 = vmul.f32 %v1171_v44, %v660_v45  ;;  %v1321_v48 = vpop.f32.mrb[1].mxu0 }
 0x1a0   : > { %v663_v49 = vpop.f32.mrb[2].mxu0 }
 0x1a1   : > { %v682_v50 = vadd.f32 %v1172_v46, %v674_v47  ;;  %v1322_v51 = vpop.f32.mrb[3].mxu0 }
 0x1a3   : > { %v683_v52 = vmax.f32 %v682_v50, 0.0 }
 0x1a5   : > { %v686_v53 = vrot.slane %v683_v52, 7  ;;  %v684_v1 = vpack.c.bf16 %v683_v52, %v683_v52  ;;  %v689_v9 = vrot.slane %v683_v52, 1 }
 0x1a7   : > { %v1182_v55 = vpack.c.bf16 %v686_v53, %v686_v53  ;;  %v1201_v10 = vpack.c.bf16 %v689_v9, %v689_v9 }
 0x1a9   : > { %1340 = vmatmul.mubr.msk.bf16.vlgmr.msra.gmra.mrb[0].mxu1 %vm1149_vm2, %v1182_v55 }
 0x1aa   : > { %1344 = vmatpush3.bf16.msra.mxu1 %v1502_v54  ;;  %1359 = vmatprep.mubr.msk.bf16.mxu1 %vm1682_vm0, %v1681_v0 }
 0x1ab   : > { %1345 = vmatprep.subr.bf16.mxu1 %v1681_v0 }
 0x1ae   : > { %1346 = vmatpush3.bf16.msra.mxu1 %v1503_v56 }
 0x1af   : > { %1347 = vmatprep.subr.bf16.mxu1 %v1681_v0 }
 0x1b2   : > { %1348 = vmatpush3.bf16.msra.mxu1 %v1504_v57 }
 0x1b3   : > { %1349 = vmatprep.subr.bf16.mxu1 %v1681_v0 }
 0x1b6   : > { %1350 = vmatpush3.bf16.msra.mxu1 %v1505_v58 }
 0x1b7   : > { %1351 = vmatprep.subr.bf16.mxu1 %v1681_v0 }
 0x1ba   : > { %1352 = vmatpush3.bf16.msra.mxu1 %v1506_v59 }
 0x1bb   : > { %1353 = vmatprep.subr.bf16.mxu1 %v1681_v0 }
 0x1be   : > { %1354 = vmatpush3.bf16.msra.mxu1 %v1507_v60 }
 0x1bf   : > { %1355 = vmatprep.subr.bf16.mxu1 %v1681_v0 }
 0x1c2   : > { %1356 = vmatpush3.bf16.msra.mxu1 %v1508_v61 }
 0x1c3   : > { %1357 = vmatprep.subr.bf16.mxu1 %v1681_v0 }
 0x1c6   : > { %1358 = vmatpush3.bf16.msra.mxu1 %v1509_v62 }
 0x1c7   : > { %1363 = vmatprep.subr.bf16.mxu1 %v1681_v0 }
 0x1c9   : > { %1360 = vmatmul.mubr.bf16.vlgmr.msra.gmra.mrb[0].mxu1 %v684_v1 }
 0x1ca   : > { %1364 = vmatpush3.bf16.msra.mxu1 %v1510_v63  ;;  %1379 = vmatprep.mubr.msk.bf16.mxu1 %vm1682_vm0, %v1681_v0 }
 0x1cb   : > { %1365 = vmatprep.subr.bf16.mxu1 %v1681_v0 }
 0x1ce   : > { %1366 = vmatpush3.bf16.msra.mxu1 %v1511_v2 }
 0x1cf   : > { %1367 = vmatprep.subr.bf16.mxu1 %v1681_v0 }
 0x1d2   : > { %1368 = vmatpush3.bf16.msra.mxu1 %v1512_v3 }
 0x1d3   : > { %1369 = vmatprep.subr.bf16.mxu1 %v1681_v0 }
 0x1d6   : > { %1370 = vmatpush3.bf16.msra.mxu1 %v1513_v4 }
 0x1d7   : > { %1371 = vmatprep.subr.bf16.mxu1 %v1681_v0 }
 0x1da   : > { %1372 = vmatpush3.bf16.msra.mxu1 %v1514_v5 }
 0x1db   : > { %1373 = vmatprep.subr.bf16.mxu1 %v1681_v0 }
 0x1de   : > { %1374 = vmatpush3.bf16.msra.mxu1 %v1515_v6 }
 0x1df   : > { %1375 = vmatprep.subr.bf16.mxu1 %v1681_v0 }
 0x1e2   : > { %1376 = vmatpush3.bf16.msra.mxu1 %v1516_v7 }
 0x1e3   : > { %1377 = vmatprep.subr.bf16.mxu1 %v1681_v0 }
 0x1e6   : > { %1378 = vmatpush3.bf16.msra.mxu1 %v1517_v8 }
 0x1e9   : > { %1380 = vmatmul.mubr.msk.bf16.vlgmr.msra.gmra.mrb[0].mxu1 %vm1168_vm4, %v1201_v10 }
 0x2bc   : > { %v1000_v12 = vpop.f32.mrb[0].mxu1 }
 0x2bd   : > { %v1014_v14 = vmul.f32 %v1203_v11, %v1000_v12  ;;  %v1381_v0 = vpop.f32.mrb[1].mxu1 }
 0x2be   : > { %v1003_v15 = vpop.f32.mrb[2].mxu1 }
 0x2bf   : > { %v1022_v16 = vadd.f32 %v1204_v13, %v1014_v14  ;;  %v1382_v17 = vpop.f32.mrb[3].mxu1 }
 0x2c1   : > { %v1023_v18 = vmax.f32 %v1022_v16, 0.0 }
 0x2c3   : > { %v1024_v19 = vpack.c.bf16 %v1023_v18, %v1023_v18 }
 0x2c5   : > { %1025 = vst [vmem:[%s322_s19] sm:$0xf] %v1024_v19 }
 0x2c6   : > { %1617 = shalt.err (!%p1614_p2)
}
 0x2c7   : > { %s1618_s12 = scalar_lea.hbm %s2034_s9, 64  ;;  %s1622_s21 = scalar_lea.hbm %s2085_s7, 128 }
 0x2c8   : > { %p1619_p13 = scmp.ne.s32.totalorder %s2034_s9, %s1618_s12  ;;  %p1623_p4 = scmp.lt.u32.totalorder %s2034_s9, %s2085_s7 }
 0x2c9   : > { %p1624_p5 = scmp.lt.u32.totalorder %s1622_s21, %s1618_s12  ;;  %p1626_p11 = scmp.lt.u32.totalorder %s1618_s12, %s2034_s9 }
 0x2ca   : > { %p1620_p6 = pnand %p1619_p13, %p2103_p0 }
 0x2cb   : > { %p1625_p8 = por %p1624_p5, %p1623_p4 }
 0x2cc   : > { %p1621_p10 = pneg %p1620_p6 }
 0x2cd   : > { %p1627_p1 = por %p1626_p11, %p1625_p8 }
 0x2cf   : > { %p1628_p3 = pnand %p1627_p1, %p1621_p10 }
 0x2d1   : > { %1631 = shalt.err (!%p1628_p3)
}
 0x2d2   : > { %1409 = dma.vmem_to_hbm [thread:$0]  (%p2103_p0), %s2036_s23, 64, %s2034_s9, %s1027_s20  }
 0x2d3 PF: > { %s1052_s29 = sand.u32 1, %s1662_s24   ;;  %p2104_p7 = scmp.ne.s32.totalorder %s2090_s8, 0 }
 0x2d4   : > { %p2105_p9 = scmp.ge.s32.totalorder %s1674_s27, 2  ;;  %s1053_s30 = scalar_lea.sflag [#allocation4], %s1052_s29 }
 0x2d6   : > { %p1423_p12 = pnand %p2105_p9, %p2104_p7 }
 0x2d8   : > { %1657 = dma.done.wait (!%p1423_p12), %s1053_s30, 64  }
 0x2d9   : > { %1659 = vsyncadd (!%p1423_p12), %s1053_s30, 4294967232  ;;  %p21_p2 = scmp.ge.s32.totalorder %s1834_s13, 4   ;;  %s2106_s24 = smov %s1666_s25 }
 0x2da   : > { %s2107_s25 = smov %s1670_s26  ;;  %s2108_s26 = smov %s1850_s17 }
 0x2db   : > { %s2109_s27 = smov %s1834_s13  ;;  %23 = sbr.rel (!%p21_p2) target bundleno = 6 (0x6), region = 105 }
 0x2e2   :  { %1058 = vsyncpa [#allocation3], 1 }
 0x2e3   :  { %1060 = vsyncpa [#allocation3 + $0x1], 1 }
 0x2e4   :  { %1061 = vsyncpa [#allocation6], 1 }
 0x2e5   :  { %1062 = vsyncpa [#allocation4], 1 }
 0x2e6   :  { %1064 = vsyncpa [#allocation4 + $0x1], 1 }

</bundles_post_ra>
